<compile_context>
chip_gen: v7x
topology: tpu7x:2x2x1
jax: 0.10.0
libtpu: 0.0.40
codegen_flags: <defaults>
</compile_context>

<pallas_src>
import functools
import math

import numpy as np
import jax
import jax.numpy as jnp
from jax.experimental import pallas as pl
from jax.experimental.pallas import tpu as pltpu


def _round_up(x, m):
    return ((x + m - 1) // m) * m


def _vmem_limit_bytes():
    # Generation-aware scoped-VMEM budget: ~3/4 of physical VMEM, capped.
    # (v5e/v6e: 128 MiB -> 96 MiB; v7x: 64 MiB -> 48 MiB.)
    try:
        cap = int(pltpu.get_tpu_info().vmem_capacity_bytes)
    except Exception:
        cap = 64 * 1024 * 1024
    return int(max(32 * 1024 * 1024, min(cap * 3 // 4, 96 * 1024 * 1024)))


VMEM_LIMIT = _vmem_limit_bytes()


# -----------------------------------------------------------------------------
# Tile selection: prefer tiles that divide the problem exactly (no padding /
# output slicing); lane dims are multiples of 128 or the full array dim.
# -----------------------------------------------------------------------------
def _pick_tm(m):
    for t in (512, 256, 128):
        if m % t == 0:
            return t, m
    if m <= 1024:
        mp = _round_up(m, 8)
        return mp, mp
    mp = _round_up(m, 256)
    return 256, mp


def _pick_tn(n):
    for t in (512, 384, 256, 128):
        if n % t == 0:
            return t
    return n                            # ragged N -> full-N block (>=320 lanes)


def _pick_tk(k):
    # lhs lane dim => must be a multiple of 128 or the full K.
    for t in (512, 384, 256, 128):
        if k % t == 0:
            return t
    return k                            # ragged K -> single full-K block


# -----------------------------------------------------------------------------
# Tiled matmul + bias (bf16 operands, f32 VMEM scratch accumulator, bf16 store
# once on the last K step).  Used for every Linear and every Conv2d.
# -----------------------------------------------------------------------------
def _matmul_bias_kernel(a_ref, b_ref, bias_ref, o_ref, acc_ref):
    @pl.when(pl.program_id(2) == 0)
    def _init():
        acc_ref[...] = jnp.broadcast_to(bias_ref[...].astype(jnp.float32),
                                        acc_ref.shape)

    acc_ref[...] += jnp.dot(a_ref[...], b_ref[...],
                            preferred_element_type=jnp.float32)

    @pl.when(pl.program_id(2) == pl.num_programs(2) - 1)
    def _fin():
        o_ref[...] = acc_ref[...].astype(o_ref.dtype)


@jax.jit
def matmul_bias(a, b, bias):
    """a:(M,K) @ b:(K,N) + bias(1,N) -> (M,N) bf16 with f32 accumulation."""
    M, K = a.shape
    _, N = b.shape
    a = a.astype(jnp.bfloat16)
    b = b.astype(jnp.bfloat16)
    bias = bias.astype(jnp.float32).reshape(1, N)

    tm, Mp = _pick_tm(M)
    tn = _pick_tn(N)
    tk = _pick_tk(K)
    if Mp != M:
        a = jnp.pad(a, ((0, Mp - M), (0, 0)))

    out = pl.pallas_call(
        _matmul_bias_kernel,
        out_shape=jax.ShapeDtypeStruct((Mp, N), jnp.bfloat16),
        grid=(Mp // tm, N // tn, K // tk),
        in_specs=[
            pl.BlockSpec((tm, tk), lambda i, j, k: (i, k)),
            pl.BlockSpec((tk, tn), lambda i, j, k: (k, j)),
            pl.BlockSpec((1, tn), lambda i, j, k: (0, j)),
        ],
        out_specs=pl.BlockSpec((tm, tn), lambda i, j, k: (i, j)),
        scratch_shapes=[pltpu.VMEM((tm, tn), jnp.float32)],
        compiler_params=pltpu.CompilerParams(
            dimension_semantics=("parallel", "parallel", "arbitrary"),
            vmem_limit_bytes=VMEM_LIMIT),
    )(a, b, bias)
    return out[:M] if Mp != M else out


# -----------------------------------------------------------------------------
# GroupNorm (optionally fused with SiLU), NHWC.  One lane-dense (HW, C) block
# per image; per-group stats via tiny one-hot mask matmuls (no lane reshapes).
# -----------------------------------------------------------------------------
def _groupnorm_kernel(x_ref, g_ref, b_ref, o_ref, *, groups, eps, silu):
    x = x_ref[0].astype(jnp.float32)                      # (HW, C)
    hw, c = x.shape
    cg = c // groups
    s1 = jnp.sum(x, axis=0, keepdims=True)                # (1, C)
    s2 = jnp.sum(x * x, axis=0, keepdims=True)            # (1, C)
    m_cg = (jax.lax.broadcasted_iota(jnp.int32, (c, groups), 0) // cg ==
            jax.lax.broadcasted_iota(jnp.int32, (c, groups), 1)
            ).astype(jnp.float32)                         # (C, G)
    m_gc = (jax.lax.broadcasted_iota(jnp.int32, (groups, c), 0) ==
            jax.lax.broadcasted_iota(jnp.int32, (groups, c), 1) // cg
            ).astype(jnp.float32)                         # (G, C)
    inv_cnt = 1.0 / float(hw * cg)
    g1 = jnp.dot(s1, m_cg, preferred_element_type=jnp.float32) * inv_cnt
    g2 = jnp.dot(s2, m_cg, preferred_element_type=jnp.float32) * inv_cnt
    gvar = jnp.maximum(g2 - g1 * g1, 0.0)
    mean_c = jnp.dot(g1, m_gc, preferred_element_type=jnp.float32)   # (1, C)
    var_c = jnp.dot(gvar, m_gc, preferred_element_type=jnp.float32)  # (1, C)
    y = (x - mean_c) * jax.lax.rsqrt(var_c + eps)
    y = y * g_ref[...] + b_ref[...]
    if silu:
        y = y * (1.0 / (1.0 + jnp.exp(-y)))
    o_ref[0] = y.astype(o_ref.dtype)


@functools.partial(jax.jit, static_argnames=("groups", "eps", "silu"))
def group_norm(x, gamma, beta, *, groups=32, eps=1e-5, silu=False):
    B, H, W, C = x.shape
    HW = H * W
    xr = x.reshape(B, HW, C).astype(jnp.bfloat16)
    # TODO(synk): tile the HW axis (two-pass stats) for very large feature maps.
    out = pl.pallas_call(
        functools.partial(_groupnorm_kernel, groups=groups, eps=eps, silu=silu),
        out_shape=jax.ShapeDtypeStruct((B, HW, C), jnp.bfloat16),
        grid=(B,),
        in_specs=[
            pl.BlockSpec((1, HW, C), lambda i: (i, 0, 0)),
            pl.BlockSpec((1, C), lambda i: (0, 0)),
            pl.BlockSpec((1, C), lambda i: (0, 0)),
        ],
        out_specs=pl.BlockSpec((1, HW, C), lambda i: (i, 0, 0)),
        compiler_params=pltpu.CompilerParams(
            dimension_semantics=("parallel",),
            vmem_limit_bytes=VMEM_LIMIT),
    )(xr, gamma.reshape(1, C).astype(jnp.float32),
      beta.reshape(1, C).astype(jnp.float32))
    return out.reshape(B, H, W, C)


# -----------------------------------------------------------------------------
# LayerNorm: row-tiled, channels on lanes, bf16 I/O, f32 math.
# -----------------------------------------------------------------------------
def _layernorm_kernel(x_ref, g_ref, b_ref, o_ref, *, eps):
    x = x_ref[...].astype(jnp.float32)
    mean = jnp.mean(x, axis=-1, keepdims=True)
    var = jnp.mean(jnp.square(x - mean), axis=-1, keepdims=True)
    y = (x - mean) * jax.lax.rsqrt(var + eps)
    o_ref[...] = (y * g_ref[...] + b_ref[...]).astype(o_ref.dtype)


@functools.partial(jax.jit, static_argnames=("eps",))
def layer_norm(x, gamma, beta, *, eps=1e-5):
    B, T, C = x.shape
    R = B * T
    xr = x.reshape(R, C).astype(jnp.bfloat16)
    rblk = min(256, _round_up(R, 8))
    Rp = _round_up(R, rblk)
    if Rp != R:
        xr = jnp.pad(xr, ((0, Rp - R), (0, 0)))
    out = pl.pallas_call(
        functools.partial(_layernorm_kernel, eps=eps),
        out_shape=jax.ShapeDtypeStruct((Rp, C), jnp.bfloat16),
        grid=(Rp // rblk,),
        in_specs=[
            pl.BlockSpec((rblk, C), lambda i: (i, 0)),
            pl.BlockSpec((1, C), lambda i: (0, 0)),
            pl.BlockSpec((1, C), lambda i: (0, 0)),
        ],
        out_specs=pl.BlockSpec((rblk, C), lambda i: (i, 0)),
        compiler_params=pltpu.CompilerParams(
            dimension_semantics=("parallel",),
            vmem_limit_bytes=VMEM_LIMIT),
    )(xr, gamma.reshape(1, C).astype(jnp.float32),
      beta.reshape(1, C).astype(jnp.float32))
    out = out[:R] if Rp != R else out
    return out.reshape(B, T, C)


# -----------------------------------------------------------------------------
# GEGLU: x * gelu(gate), split done in-kernel on a 128-aligned lane boundary.
# -----------------------------------------------------------------------------
def _erf_approx(x):
    a1, a2, a3, a4, a5 = (0.254829592, -0.284496736, 1.421413741,
                          -1.453152027, 1.061405429)
    p = 0.3275911
    sign = jnp.where(x >= 0.0, 1.0, -1.0)
    ax = jnp.abs(x)
    t = 1.0 / (1.0 + p * ax)
    poly = ((((a5 * t + a4) * t + a3) * t + a2) * t + a1) * t
    return sign * (1.0 - poly * jnp.exp(-ax * ax))


def _geglu_kernel(h_ref, o_ref):
    h = h_ref[...].astype(jnp.float32)
    half = h.shape[-1] // 2
    xh = h[:, :half]
    g = h[:, half:]
    gelu = 0.5 * g * (1.0 + _erf_approx(g * (1.0 / math.sqrt(2.0))))
    o_ref[...] = (xh * gelu).astype(o_ref.dtype)


@jax.jit
def geglu(h):
    R, F2 = h.shape
    h = h.astype(jnp.bfloat16)
    rblk = min(128, _round_up(R, 8))
    Rp = _round_up(R, rblk)
    if Rp != R:
        h = jnp.pad(h, ((0, Rp - R), (0, 0)))
    out = pl.pallas_call(
        _geglu_kernel,
        out_shape=jax.ShapeDtypeStruct((Rp, F2 // 2), jnp.bfloat16),
        grid=(Rp // rblk,),
        in_specs=[pl.BlockSpec((rblk, F2), lambda i: (i, 0))],
        out_specs=pl.BlockSpec((rblk, F2 // 2), lambda i: (i, 0)),
        compiler_params=pltpu.CompilerParams(
            dimension_semantics=("parallel",),
            vmem_limit_bytes=VMEM_LIMIT),
    )(h)
    return out[:R] if Rp != R else out


# -----------------------------------------------------------------------------
# Attention.  Short sequences: fused single-KV-block kernel with several heads
# per grid step.  Long sequences: flash-style online-softmax kernel.
# -----------------------------------------------------------------------------
def _attn_small_kernel(q_ref, k_ref, v_ref, o_ref, *, kv_len, scale):
    s = jnp.einsum('hqd,hkd->hqk', q_ref[...], k_ref[...],
                   preferred_element_type=jnp.float32) * scale
    col = jax.lax.broadcasted_iota(jnp.int32, s.shape, 2)
    s = jnp.where(col < kv_len, s, -1e30)
    m = jnp.max(s, axis=-1, keepdims=True)
    p = jnp.exp(s - m)
    l = jnp.sum(p, axis=-1, keepdims=True)
    o = jnp.einsum('hqk,hkd->hqd', p.astype(v_ref.dtype), v_ref[...],
                   preferred_element_type=jnp.float32)
    o_ref[...] = (o * pl.reciprocal(l, approx=True)).astype(o_ref.dtype)


def _flash_attn_kernel(q_ref, k_ref, v_ref, o_ref, m_sc, l_sc, acc_sc,
                       *, kv_len, scale):
    kv_idx = pl.program_id(2)

    @pl.when(kv_idx == 0)
    def _init():
        m_sc[...] = jnp.full_like(m_sc, -jnp.inf)
        l_sc[...] = jnp.zeros_like(l_sc)
        acc_sc[...] = jnp.zeros_like(acc_sc)

    q = q_ref[0]
    k = k_ref[0]
    s = jax.lax.dot_general(q, k, (((1,), (1,)), ((), ())),
                            preferred_element_type=jnp.float32) * scale
    tkv = k_ref.shape[1]
    col = kv_idx * tkv + jax.lax.broadcasted_iota(jnp.int32, s.shape, 1)
    s = jnp.where(col < kv_len, s, -1e30)

    m_prev = m_sc[...]
    m_new = jnp.maximum(m_prev, jnp.max(s, axis=-1, keepdims=True))
    alpha = jnp.exp(m_prev - m_new)
    p = jnp.exp(s - m_new)
    l_sc[...] = alpha * l_sc[...] + jnp.sum(p, axis=-1, keepdims=True)
    acc_sc[...] = alpha * acc_sc[...] + jnp.dot(
        p.astype(v_ref.dtype), v_ref[0], preferred_element_type=jnp.float32)
    m_sc[...] = m_new

    @pl.when(kv_idx == pl.num_programs(2) - 1)
    def _fin():
        o_ref[0] = (acc_sc[...] *
                    pl.reciprocal(l_sc[...], approx=True)).astype(o_ref.dtype)


@functools.partial(jax.jit, static_argnames=("scale",))
def mha_attention(q, k, v, *, scale):
    # q: (BH, M, D), k/v: (BH, N, D) -> (BH, M, D) bf16
    BH, M, D = q.shape
    _, N, _ = k.shape
    q = q.astype(jnp.bfloat16)
    k = k.astype(jnp.bfloat16)
    v = v.astype(jnp.bfloat16)

    Np_small = _round_up(N, 8)
    if Np_small <= 256:
        hblk = 4 if BH % 4 == 0 else (2 if BH % 2 == 0 else 1)
        if M <= 256:
            tq = _round_up(M, 8)
            Mp = tq
        else:
            tq = 256
            Mp = _round_up(M, 256)
        Np = Np_small
        if Mp != M:
            q = jnp.pad(q, ((0, 0), (0, Mp - M), (0, 0)))
        if Np != N:
            k = jnp.pad(k, ((0, 0), (0, Np - N), (0, 0)))
            v = jnp.pad(v, ((0, 0), (0, Np - N), (0, 0)))
        out = pl.pallas_call(
            functools.partial(_attn_small_kernel, kv_len=N, scale=scale),
            out_shape=jax.ShapeDtypeStruct((BH, Mp, D), jnp.bfloat16),
            grid=(BH // hblk, Mp // tq),
            in_specs=[
                pl.BlockSpec((hblk, tq, D), lambda h, i: (h, i, 0)),
                pl.BlockSpec((hblk, Np, D), lambda h, i: (h, 0, 0)),
                pl.BlockSpec((hblk, Np, D), lambda h, i: (h, 0, 0)),
            ],
            out_specs=pl.BlockSpec((hblk, tq, D), lambda h, i: (h, i, 0)),
            compiler_params=pltpu.CompilerParams(
                dimension_semantics=("parallel", "parallel"),
                vmem_limit_bytes=VMEM_LIMIT),
        )(q, k, v)
        return out[:, :M, :] if Mp != M else out

    # Flash path (online softmax) for long sequences.
    tq = min(128, _round_up(M, 8))
    Mp = _round_up(M, tq)
    tkv = 128
    Np = _round_up(N, tkv)
    if Mp != M:
        q = jnp.pad(q, ((0, 0), (0, Mp - M), (0, 0)))
    if Np != N:
        k = jnp.pad(k, ((0, 0), (0, Np - N), (0, 0)))
        v = jnp.pad(v, ((0, 0), (0, Np - N), (0, 0)))
    out = pl.pallas_call(
        functools.partial(_flash_attn_kernel, kv_len=N, scale=scale),
        out_shape=jax.ShapeDtypeStruct((BH, Mp, D), jnp.bfloat16),
        grid=(BH, Mp // tq, Np // tkv),
        in_specs=[
            pl.BlockSpec((1, tq, D), lambda h, i, j: (h, i, 0)),
            pl.BlockSpec((1, tkv, D), lambda h, i, j: (h, j, 0)),
            pl.BlockSpec((1, tkv, D), lambda h, i, j: (h, j, 0)),
        ],
        out_specs=pl.BlockSpec((1, tq, D), lambda h, i, j: (h, i, 0)),
        scratch_shapes=[pltpu.VMEM((tq, 1), jnp.float32),
                        pltpu.VMEM((tq, 1), jnp.float32),
                        pltpu.VMEM((tq, D), jnp.float32)],
        compiler_params=pltpu.CompilerParams(
            dimension_semantics=("parallel", "parallel", "arbitrary"),
            vmem_limit_bytes=VMEM_LIMIT),
    )(q, k, v)
    return out[:, :M, :] if Mp != M else out


# -----------------------------------------------------------------------------
# Conv2d (NHWC) and Linear wrappers.
# -----------------------------------------------------------------------------
def conv2d(x, p, *, stride=1):
    """NHWC conv: patches(B*Ho*Wo, k*k*Cin) @ W(k*k*Cin, Cout) + bias.

    Batch is folded into M; output stays lane-dense in Cout (>= 320).
    """
    # TODO(synk): replace the materialized patch gather with a direct conv
    # kernel (tap as an extra 'arbitrary' grid axis reading shifted windows).
    B, H, W, Cin = x.shape
    k = p["k"]
    wt = p["wt"]                                  # (k*k*Cin, Cout) bf16
    Cout = wt.shape[1]
    xb = x.astype(jnp.bfloat16)
    if k == 1 and stride == 1:
        cols = xb.reshape(B * H * W, Cin)
        Ho, Wo = H, W
    else:
        pad = (k - 1) // 2
        xp = jnp.pad(xb, ((0, 0), (pad, pad), (pad, pad), (0, 0)))
        Ho = (H + 2 * pad - k) // stride + 1
        Wo = (W + 2 * pad - k) // stride + 1
        taps = []
        for dy in range(k):
            for dx in range(k):
                taps.append(xp[:, dy:dy + stride * Ho:stride,
                               dx:dx + stride * Wo:stride, :])
        cols = jnp.concatenate(taps, axis=-1).reshape(B * Ho * Wo, k * k * Cin)
    y = matmul_bias(cols, wt, p["b"])
    return y.reshape(B, Ho, Wo, Cout)


def linear(x, p):
    shp = x.shape
    x2 = x.reshape(-1, shp[-1])
    y = matmul_bias(x2, p["wt"], p["b"])
    return y.reshape(shp[:-1] + (p["wt"].shape[1],))


# -----------------------------------------------------------------------------
# Attention modules
# -----------------------------------------------------------------------------
def _split_heads(t, n_heads):
    B, T, C = t.shape
    d = C // n_heads
    return t.reshape(B, T, n_heads, d).transpose(0, 2, 1, 3).reshape(B * n_heads, T, d)


def _merge_heads(t, batch, n_heads):
    BH, T, d = t.shape
    return t.reshape(batch, n_heads, T, d).transpose(0, 2, 1, 3).reshape(batch, T, n_heads * d)


def self_attention(x, p, n_heads):
    B, T, C = x.shape
    d_head = C // n_heads
    qkv = linear(x, p["in_proj"])
    q, k, v = jnp.split(qkv, 3, axis=-1)
    o = mha_attention(_split_heads(q, n_heads), _split_heads(k, n_heads),
                      _split_heads(v, n_heads), scale=1.0 / math.sqrt(d_head))
    return linear(_merge_heads(o, B, n_heads), p["out_proj"])


def cross_attention(x, context, p, n_heads):
    B, T, C = x.shape
    d_head = C // n_heads
    q = linear(x, p["q_proj"])
    k = linear(context, p["k_proj"])
    v = linear(context, p["v_proj"])
    o = mha_attention(_split_heads(q, n_heads), _split_heads(k, n_heads),
                      _split_heads(v, n_heads), scale=1.0 / math.sqrt(d_head))
    return linear(_merge_heads(o, B, n_heads), p["out_proj"])


# -----------------------------------------------------------------------------
# UNet blocks (activations NHWC)
# -----------------------------------------------------------------------------
def attention_block(x, context, p):
    n_heads = p["n_heads"]
    residue_long = x
    h = group_norm(x, p["groupnorm"]["gamma"], p["groupnorm"]["beta"],
                   eps=1e-6, silu=False)
    h = conv2d(h, p["conv_in"])
    B, H, W, C = h.shape
    h = h.reshape(B, H * W, C)                    # NHWC -> tokens: free reshape

    res = h
    h = layer_norm(h, p["layernorm1"]["gamma"], p["layernorm1"]["beta"])
    h = self_attention(h, p["self_attention"], n_heads)
    h = h + res

    res = h
    h = layer_norm(h, p["layernorm2"]["gamma"], p["layernorm2"]["beta"])
    h = cross_attention(h, context, p["cross_attention"], n_heads)
    h = h + res

    res = h
    h = layer_norm(h, p["layernorm3"]["gamma"], p["layernorm3"]["beta"])
    hg = linear(h, p["linear_geglu1"])            # (B, HW, 8C)
    h = geglu(hg.reshape(-1, 8 * C)).reshape(B, H * W, 4 * C)
    h = linear(h, p["linear_geglu2"])
    h = h + res

    h = h.reshape(B, H, W, C)
    h = conv2d(h, p["conv_out"])
    return h + residue_long


def residual_block(x, time, p):
    residue = x
    h = group_norm(x, p["groupnorm1"]["gamma"], p["groupnorm1"]["beta"], silu=True)
    h = conv2d(h, p["conv_feature"])
    t = linear(time, p["linear_time"]).astype(jnp.float32)   # (1, Cout)
    t = (t * jax.nn.sigmoid(t)).astype(jnp.bfloat16)         # F.silu AFTER linear_time (spec order)
    h = h + t.reshape(1, 1, 1, -1)                           # channels-last broadcast
    h = group_norm(h, p["groupnorm2"]["gamma"], p["groupnorm2"]["beta"], silu=True)
    h = conv2d(h, p["conv_merged"])
    if "residual_layer" in p:
        residue = conv2d(residue, p["residual_layer"])
    return h + residue


def upsample(x, p):
    # TODO(synk): fuse the nearest-neighbor gather into the conv patch build.
    x = jnp.repeat(jnp.repeat(x, 2, axis=1), 2, axis=2)
    return conv2d(x, p["conv"])


def apply_layer(layer, x, context, time):
    t = layer["type"]
    if t == "res":
        return residual_block(x, time, layer)
    if t == "attn":
        return attention_block(x, context, layer)
    if t == "conv":
        return conv2d(x, layer, stride=layer["stride"])
    if t == "upsample":
        return upsample(x, layer)
    raise ValueError(t)


def switch_sequential(layers, x, context, time):
    for layer in layers:
        x = apply_layer(layer, x, context, time)
    return x


def unet_forward(params, x, context, time):
    x = jnp.transpose(x, (0, 2, 3, 1))            # NCHW -> NHWC once
    skips = []
    for layer in params["encoder"]:
        x = switch_sequential(layer, x, context, time)
        skips.append(x)
    x = switch_sequential(params["bottleneck"], x, context, time)
    for layer in params["decoder"]:
        x = jnp.concatenate([x, skips.pop()], axis=-1)   # channel concat (last dim)
        x = switch_sequential(layer, x, context, time)
    return jnp.transpose(x, (0, 3, 1, 2)).astype(jnp.float32)   # back to NCHW


# -----------------------------------------------------------------------------
# Deterministic parameter construction -- weights PRE-PACKED for the kernels
# (conv: (k*k*Cin, Cout) bf16 in tap-major / cin-minor order matching the NHWC
# patch gather; linear: (K, N) bf16; biases (1, N) f32).
# -----------------------------------------------------------------------------
class ParamFactory:
    def __init__(self, seed=0):
        self.rng = np.random.default_rng(seed)

    def _t(self, shape, scale):
        return (self.rng.random(shape, dtype=np.float32) * 2.0 - 1.0) * scale

    def conv(self, cin, cout, k):
        s = 1.0 / math.sqrt(cin * k * k)
        w = self._t((cout, cin, k, k), s)
        wt = w.transpose(2, 3, 1, 0).reshape(k * k * cin, cout)
        b = self._t((cout,), s)
        return {"wt": jnp.asarray(wt, dtype=jnp.bfloat16),
                "b": jnp.asarray(b.reshape(1, cout), dtype=jnp.float32),
                "k": k}

    def linear(self, fin, fout, bias=True):
        s = 1.0 / math.sqrt(fin)
        w = self._t((fout, fin), s)
        b = self._t((fout,), s) if bias else np.zeros((fout,), np.float32)
        return {"wt": jnp.asarray(w.T, dtype=jnp.bfloat16),
                "b": jnp.asarray(b.reshape(1, fout), dtype=jnp.float32)}

    def norm(self, c):
        return {"gamma": jnp.ones((c,), jnp.float32),
                "beta": jnp.zeros((c,), jnp.float32)}


def make_attention_block(pf, n_heads, d_head, d_context=768):
    c = n_heads * d_head
    return {"type": "attn", "n_heads": n_heads,
            "groupnorm": pf.norm(c),
            "layernorm1": pf.norm(c), "layernorm2": pf.norm(c), "layernorm3": pf.norm(c),
            "conv_in": pf.conv(c, c, 1), "conv_out": pf.conv(c, c, 1),
            "self_attention": {"in_proj": pf.linear(c, 3 * c, bias=False),
                               "out_proj": pf.linear(c, c, bias=True)},
            "cross_attention": {"q_proj": pf.linear(c, c, bias=False),
                                "k_proj": pf.linear(d_context, c, bias=False),
                                "v_proj": pf.linear(d_context, c, bias=False),
                                "out_proj": pf.linear(c, c, bias=True)},
            "linear_geglu1": pf.linear(c, 4 * c * 2),
            "linear_geglu2": pf.linear(4 * c, c)}


def make_residual_block(pf, cin, cout):
    p = {"type": "res",
         "groupnorm1": pf.norm(cin), "groupnorm2": pf.norm(cout),
         "conv_feature": pf.conv(cin, cout, 3), "conv_merged": pf.conv(cout, cout, 3),
         "linear_time": pf.linear(1280, cout)}
    if cin != cout:
        p["residual_layer"] = pf.conv(cin, cout, 1)
    return p


def make_conv_layer(pf, cin, cout, k=3, stride=1):
    c = pf.conv(cin, cout, k)
    c.update({"type": "conv", "stride": stride})
    return c


def make_upsample(pf, c):
    return {"type": "upsample", "conv": pf.conv(c, c, 3)}


def make_unet(pf):
    encoder = [
        [make_conv_layer(pf, 4, 320, 3, 1)],
        [make_residual_block(pf, 320, 320), make_attention_block(pf, 8, 40)],
        [make_residual_block(pf, 320, 320), make_attention_block(pf, 8, 40)],
        [make_conv_layer(pf, 320, 320, 3, 2)],
        [make_residual_block(pf, 320, 640), make_attention_block(pf, 8, 80)],
        [make_residual_block(pf, 640, 640), make_attention_block(pf, 8, 80)],
        [make_conv_layer(pf, 640, 640, 3, 2)],
        [make_residual_block(pf, 640, 1280), make_attention_block(pf, 8, 160)],
        [make_residual_block(pf, 1280, 1280), make_attention_block(pf, 8, 160)],
        [make_conv_layer(pf, 1280, 1280, 3, 2)],
        [make_residual_block(pf, 1280, 1280)],
        [make_residual_block(pf, 1280, 1280)],
    ]
    bottleneck = [make_residual_block(pf, 1280, 1280),
                  make_attention_block(pf, 8, 160),
                  make_residual_block(pf, 1280, 1280)]
    decoder = [
        [make_residual_block(pf, 2560, 1280)],
        [make_residual_block(pf, 2560, 1280)],
        [make_residual_block(pf, 2560, 1280), make_upsample(pf, 1280)],
        [make_residual_block(pf, 2560, 1280), make_attention_block(pf, 8, 160)],
        [make_residual_block(pf, 2560, 1280), make_attention_block(pf, 8, 160)],
        [make_residual_block(pf, 1920, 1280), make_attention_block(pf, 8, 160), make_upsample(pf, 1280)],
        [make_residual_block(pf, 1920, 640), make_attention_block(pf, 8, 80)],
        [make_residual_block(pf, 1280, 640), make_attention_block(pf, 8, 80)],
        [make_residual_block(pf, 960, 640), make_attention_block(pf, 8, 80), make_upsample(pf, 640)],
        [make_residual_block(pf, 960, 320), make_attention_block(pf, 8, 40)],
        [make_residual_block(pf, 640, 320), make_attention_block(pf, 8, 40)],
        [make_residual_block(pf, 640, 320), make_attention_block(pf, 8, 40)],
    ]
    return {"encoder": encoder, "bottleneck": bottleneck, "decoder": decoder}


# -----------------------------------------------------------------------------
if __name__ == "__main__":
    pf = ParamFactory(seed=0)
    params = make_unet(pf)

    key = jax.random.PRNGKey(0)
    k1, k2, k3 = jax.random.split(key, 3)
    B, H, W = 1, 8, 8                       # small latent (divisible by 8 for 3 downsamples)
    x = jax.random.normal(k1, (B, 4, H, W), jnp.float32)        # NCHW latent
    context = jax.random.normal(k2, (B, 8, 768), jnp.float32)   # (B, seq, d_context)
    time = jax.random.normal(k3, (1, 1280), jnp.float32)        # time embedding

    out = unet_forward(params, x, context, time)
    out = jax.block_until_ready(out)

    assert out.shape == (B, 320, H, W), out.shape
    assert bool(jnp.all(jnp.isfinite(out)))
    print("KERNEL_OK")
</pallas_src>

<mosaic_0001>
module attributes {stable_mosaic.version = 11 : i64} {
  func.func @_matmul_bias_kernel(%arg0: i32, %arg1: i32, %arg2: i32, %arg3: memref<64x36xbf16, #tpu.memory_space<vmem>>, %arg4: memref<36x320xbf16, #tpu.memory_space<vmem>>, %arg5: memref<1x320xf32, #tpu.memory_space<vmem>>, %arg6: memref<64x320xbf16, #tpu.memory_space<vmem>>, %arg7: memref<64x320xf32, #tpu.memory_space<vmem>>) attributes {dimension_semantics = [#tpu.dimension_semantics<parallel>, #tpu.dimension_semantics<parallel>, #tpu.dimension_semantics<arbitrary>], iteration_bounds = array<i64: 1, 1, 1>, scalar_prefetch = 0 : i64, scratch_operands = 1 : i64, tpu.core_type = #tpu.core_type<tc>, window_params = [{transform_indices = @transform_0, window_bounds = array<i64: 64, 36>}, {transform_indices = @transform_1, window_bounds = array<i64: 36, 320>}, {transform_indices = @transform_2, window_bounds = array<i64: 1, 320>}, {transform_indices = @transform_3, window_bounds = array<i64: 64, 320>}]} {
    %c0_i32 = arith.constant 0 : i32
    %0 = arith.cmpi eq, %arg2, %c0_i32 : i32
    %1 = arith.extui %0 : i1 to i32
    %c0_i32_0 = arith.constant 0 : i32
    %2 = arith.cmpi ne, %1, %c0_i32_0 : i32
    scf.if %2 {
      %c0_10 = arith.constant 0 : index
      %c0_11 = arith.constant 0 : index
      %12 = vector.load %arg5[%c0_10, %c0_11] : memref<1x320xf32, #tpu.memory_space<vmem>>, vector<1x320xf32>
      %13 = vector.shape_cast %12 : vector<1x320xf32> to vector<1x320xf32>
      %14 = vector.broadcast %13 : vector<1x320xf32> to vector<64x320xf32>
      %c0_12 = arith.constant 0 : index
      %c0_13 = arith.constant 0 : index
      %15 = vector.load %arg7[%c0_12, %c0_13] : memref<64x320xf32, #tpu.memory_space<vmem>>, vector<64x320xf32>
      tpu.vector_store %arg7[%c0_12, %c0_13], %14 {strides = array<i32>} : memref<64x320xf32, #tpu.memory_space<vmem>>, vector<64x320xf32>,
    } else {
    }
    %c0 = arith.constant 0 : index
    %c0_1 = arith.constant 0 : index
    %3 = vector.load %arg7[%c0, %c0_1] : memref<64x320xf32, #tpu.memory_space<vmem>>, vector<64x320xf32>
    %c0_2 = arith.constant 0 : index
    %c0_3 = arith.constant 0 : index
    %4 = vector.load %arg3[%c0_2, %c0_3] : memref<64x36xbf16, #tpu.memory_space<vmem>>, vector<64x36xbf16>
    %c0_4 = arith.constant 0 : index
    %c0_5 = arith.constant 0 : index
    %5 = vector.load %arg4[%c0_4, %c0_5] : memref<36x320xbf16, #tpu.memory_space<vmem>>, vector<36x320xbf16>
    %cst = arith.constant dense<0.000000e+00> : vector<64x320xf32>
    %6 = tpu.matmul %4, %5, %cst {dimension_numbers = #tpu.dot_dimension_numbers<[1], [0], [0], [1], [0, 0, 1, 1], [], []>} : vector<64x36xbf16>, vector<36x320xbf16>, vector<64x320xf32> -> vector<64x320xf32>
    %7 = arith.addf %3, %6 : vector<64x320xf32>
    %c0_6 = arith.constant 0 : index
    %c0_7 = arith.constant 0 : index
    %8 = vector.load %arg7[%c0_6, %c0_7] : memref<64x320xf32, #tpu.memory_space<vmem>>, vector<64x320xf32>
    tpu.vector_store %arg7[%c0_6, %c0_7], %7 {strides = array<i32>} : memref<64x320xf32, #tpu.memory_space<vmem>>, vector<64x320xf32>,
    %c0_i32_8 = arith.constant 0 : i32
    %9 = arith.cmpi eq, %arg2, %c0_i32_8 : i32
    %10 = arith.extui %9 : i1 to i32
    %c0_i32_9 = arith.constant 0 : i32
    %11 = arith.cmpi ne, %10, %c0_i32_9 : i32
    scf.if %11 {
      %c0_10 = arith.constant 0 : index
      %c0_11 = arith.constant 0 : index
      %12 = vector.load %arg7[%c0_10, %c0_11] : memref<64x320xf32, #tpu.memory_space<vmem>>, vector<64x320xf32>
      %13 = arith.truncf %12 : vector<64x320xf32> to vector<64x320xbf16>
      %c0_12 = arith.constant 0 : index
      %c0_13 = arith.constant 0 : index
      %14 = vector.load %arg6[%c0_12, %c0_13] : memref<64x320xbf16, #tpu.memory_space<vmem>>, vector<64x320xbf16>
      tpu.vector_store %arg6[%c0_12, %c0_13], %13 {strides = array<i32>} : memref<64x320xbf16, #tpu.memory_space<vmem>>, vector<64x320xbf16>,
    } else {
    }
    return
  }
  func.func @transform_0(%arg0: i32, %arg1: i32, %arg2: i32) -> (i32, i32) {
    %c0_i32 = arith.constant 0 : i32
    return %arg0, %arg2 : i32, i32
  }
  func.func @transform_1(%arg0: i32, %arg1: i32, %arg2: i32) -> (i32, i32) {
    %c0_i32 = arith.constant 0 : i32
    return %arg2, %arg1 : i32, i32
  }
  func.func @transform_2(%arg0: i32, %arg1: i32, %arg2: i32) -> (i32, i32) {
    %c0_i32 = arith.constant 0 : i32
    %c0_i32_0 = arith.constant 0 : i32
    return %c0_i32, %arg1 : i32, i32
  }
  func.func @transform_3(%arg0: i32, %arg1: i32, %arg2: i32) -> (i32, i32) {
    %c0_i32 = arith.constant 0 : i32
    return %arg0, %arg1 : i32, i32
  }
}

</mosaic_0001>

<bundles_post_ra>
// kernel: matmul_bias.1
= control target key start
LH: loop header
LB: loop body
LE: loop exit
PB: predicated region body
PF: predicated region fallthrough
CT: control target
= control target key end

     0   :  { %8 = vsyncpa [#allocation4], 0  ;;  %s799_s0 = inlined_call_operand.vmem [shape: bf16[64,36], index: 0, kind: input, shape index: {}]   ;;  %s800_s1 = inlined_call_operand.hbm [shape: bf16[36,320], index: 1, kind: input, shape index: {}]   ;;  %s801_s2 = inlined_call_operand.vmem [shape: f32[1,320], index: 2, kind: input, shape index: {}]   ;;  %s802_s3 = inlined_call_operand.hbm [shape: bf16[64,320], index: 3, kind: output, shape index: {}]  }
   0x1   :  { %9 = vsyncpa [#allocation5], 0  ;;  %s673_s12 = smov [#allocation3]   ;;  %s625_s16 = scalar_lea.hbm %s800_s1, 960 }
   0x2   :  { %s17_s13 = sshll.u32 %s673_s12, 4  ;;  %p626_p0 = scmp.ne.s32.totalorder %s800_s1, %s625_s16  ;;  %s18_s13 = int_to_ptr.vmem [resolvable:$true] %s17_s13 }
   0x3   :  { %p629_p1 = scmp.lt.u32.totalorder %s625_s16, %s800_s1 }
   0x5   :  { %p631_p2 = pnand %p629_p1, %p626_p0 }
   0x7   :  { %634 = shalt.err (!%p631_p2)
}
   0x8   :  { %s635_s21 = scalar_lea.vmem %s18_s13, 960  ;;  %p640_p4 = scmp.lt.s32.totalorder %s18_s13, %s18_s13 }
   0x9   :  { %p636_p3 = scmp.ne.s32.totalorder %s18_s13, %s635_s21  ;;  %p641_p5 = scmp.lt.s32.totalorder %s635_s21, %s635_s21 }
   0xb   :  { %p642_p6 = por %p641_p5, %p640_p4 }
   0xd   :  { %p643_p7 = pnand %p642_p6, %p636_p3 }
   0xf   :  { %646 = shalt.err (!%p643_p7)
}
  0x10   :  { %s674_s22 = smov 192   ;;  %s675_s23 = smov 12  }
  0x11   :  { %23 = dma.hbm_to_vmem [thread:$0]  %s800_s1, 960, %s18_s13, [#allocation4], %s674_s22, %s674_s22, %s675_s23  }
  0x12   :  { %669 = dma.done.wait [#allocation4], 960  }
  0x13   :  { %670 = vsyncadd [#allocation4], 4294966336  ;;  %v676_v0 = vmov 0   ;;  %v610_v1 = vld [vmem:[#allocation3 + $0x4] ss:$12 sps:$4 sm:$0xff]   ;;  %vm191_vm0 = vcmask 1041408   ;;  %v36_v17 = vlaneseq }
  0x14   :  { %233 = vmatprep.mubr.bf16.mxu0 %v676_v0  ;;  %v612_v2 = vld [vmem:[#allocation3] ss:$12 sps:$4 sm:$0xff]   ;;  %201 = vmatprep.subr.bf16.mxu0 %v610_v1  ;;  %v613_v3 = vld [vmem:[#allocation3 + $0x1c] ss:$12 sps:$4 sm:$0xff]   ;;  %v615_v4 = vld [vmem:[#allocation3 + $0x18] ss:$12 sps:$4 sm:$0xff]  }
  0x15   :  { %v116_v5 = vld [vmem:[#allocation3 + $0x30] sm:$0x33]  ;;  %202 = vmatpush1.bf16.msra.mxu0 %v612_v2  ;;  %v618_v7 = vld [vmem:[%s799_s0] sm:$0xff]   ;;  %vm178_vm1 = vcmask 293888   ;;  %v621_v14 = vld [vmem:[%s799_s0 + $0x8] sm:$0xff]   ;;  %v37_v18 = vshrl.u32 %v36_v17, 7 }
  0x16   :  { %v539_v6 = vcombine.low %v116_v5, %v116_v5  ;;  %203 = vmatprep.subr.bf16.mxu0 %v613_v3  ;;  %v540_v8 = vcombine.high %v116_v5, %v116_v5  ;;  %v619_v9 = vld [vmem:[#allocation3 + $0x8] ss:$12 sps:$4 sm:$0xff]   ;;  %596 = vmatprep.mubr.msk.bf16.mxu1 %vm178_vm1, %v618_v7  ;;  %v620_v10 = vld [vmem:[#allocation3 + $0x20] ss:$12 sps:$4 sm:$0xff]   ;;  %v624_v16 = vld [vmem:[%s799_s0 + $0x18] sm:$0xff]   ;;  %vm53_vm2 = vcmask 523264  }
  0x17   :  { %590 = vmatprep.subr.bf16.mxu1 %v619_v9  ;;  %v622_v12 = vld [vmem:[#allocation3 + $0x38] ss:$0 sps:$4 sm:$0x33]   ;;  %v623_v15 = vld [vmem:[%s799_s0 + $0x10] sm:$0xff]   ;;  %v34_v19 = vld [vmem:[%s801_s2] sm:$0x7] }
  0x18   :  { %v193_v11 = vsel %vm191_vm0, %v539_v6, 0  ;;  %591 = vmatpush3.bf16.msra.mxu1 %v619_v9  ;;  %v199_v13 = vsel %vm191_vm0, %v622_v12, 0  ;;  %v46_v20 = vsub.s32 2, %v37_v18  ;;  %v38_v22 = vsub.s32 0, %v37_v18  ;;  %s677_s0 = smov [#allocation6]  }
  0x19   :  { %204 = vmatpush1.bf16.msra.mxu0 %v615_v4  ;;  %592 = vmatprep.subr.bf16.mxu1 %v620_v10  ;;  %v42_v23 = vsub.s32 1, %v37_v18  ;;  %vm496_vm3 = vcmask 519168   ;;  %s517_s2 = sshll.u32 %s677_s0, 4  ;;  %s518_s2 = int_to_ptr.vmem [resolvable:$true] %s517_s2 }
  0x1a   :  { %542 = vmatprep.subr.msk.bf16.mxu0 %vm191_vm0, %v540_v8  ;;  %v47_v21 = vrot.slane %v34_v19, %v46_v20  ;;  %v748_v24 = vrot.slane %v34_v19, %v38_v22  ;;  %s647_s8 = scalar_lea.vmem %s518_s2, 1536  ;;  %p652_p9 = scmp.lt.s32.totalorder %s518_s2, %s518_s2 }
  0x1b   :  { %v750_v25 = vrot.slane %v34_v19, %v42_v23  ;;  %p648_p8 = scmp.ne.s32.totalorder %s518_s2, %s647_s8  ;;  %p653_p10 = scmp.lt.s32.totalorder %s647_s8, %s647_s8 }
  0x1c   :  { %593 = vmatpush3.bf16.msra.mxu1 %v620_v10  ;;  %60 = vst.msk [vmem:[#allocation2 + $0x40] sm:$0xff] %vm53_vm2, %v47_v21  ;;  %54 = vst.msk [vmem:[#allocation2 + $0x10] sm:$0xff] %vm53_vm2, %v47_v21 }
  0x1d   :  { %206 = vmatpush1.bf16.msra.mxu0 %v193_v11  ;;  %604 = vmatprep.subr.msk.bf16.mxu1 %vm191_vm0, %v622_v12  ;;  %57 = vst.msk [vmem:[#allocation2 + $0x28] sm:$0xff] %vm53_vm2, %v47_v21  ;;  %63 = vst.msk [vmem:[#allocation2 + $0x58] sm:$0xff] %vm53_vm2, %v47_v21  ;;  %p654_p11 = por %p653_p10, %p652_p9 }
  0x1e   :  { %66 = vst.msk [vmem:[#allocation2 + $0x70] sm:$0xff] %vm53_vm2, %v47_v21  ;;  %69 = vst.msk [vmem:[#allocation2 + $0x88] sm:$0xff] %vm53_vm2, %v47_v21 }
  0x1f   :  { %72 = vst.msk [vmem:[#allocation2 + $0xa0] sm:$0xff] %vm53_vm2, %v47_v21  ;;  %75 = vst.msk [vmem:[#allocation2 + $0xb8] sm:$0xff] %vm53_vm2, %v47_v21  ;;  %p655_p12 = pnand %p654_p11, %p648_p8 }
  0x20   :  { %543 = vmatmul.mubr.msk.bf16.vlgmr.msra.gmra.mrb[0].mxu0 %vm178_vm1, %v618_v7  ;;  %595 = vmatpush3.bf16.msra.mxu1 %v199_v13 }
  0x21   :  { %243 = vmatprep.mubr.bf16.mxu0 %v676_v0 }
  0x23   :  { %597 = vmatmul.mubr.msk.bf16.vlgmr.msra.gmra.mrb[0].mxu1 %vm178_vm1, %v621_v14  ;;  %v84_v31 = vld [vmem:[#allocation2 + $0x40] sm:$0xff]  ;;  %v78_v34 = vld [vmem:[#allocation2 + $0x10] sm:$0xff] }
  0x24   :  { %600 = vmatprep.mubr.msk.bf16.mxu1 %vm178_vm1, %v623_v15  ;;  %v87_v38 = vld [vmem:[#allocation2 + $0x58] sm:$0xff]  ;;  %v81_v41 = vld [vmem:[#allocation2 + $0x28] sm:$0xff] }
  0x25   :  { %v90_v56 = vld [vmem:[#allocation2 + $0x70] sm:$0xff]  ;;  %v93_v63 = vld [vmem:[#allocation2 + $0x88] sm:$0xff] }
  0x26   :  { %v96_v53 = vld [vmem:[#allocation2 + $0xa0] sm:$0xff]  ;;  %v99_v60 = vld [vmem:[#allocation2 + $0xb8] sm:$0xff] }
  0x28   :  { %544 = vmatmul.mubr.msk.bf16.gmra.mrb[4].mxu0 %vm178_vm1, %v621_v14 }
  0x29   :  { %253 = vmatprep.mubr.bf16.mxu0 %v676_v0 }
  0x2b   :  { %601 = vmatmul.mubr.msk.bf16.gmra.mrb[4].mxu1 %vm178_vm1, %v624_v16 }
  0x30   :  { %545 = vmatmul.mubr.msk.bf16.gmra.mrb[8].mxu0 %vm178_vm1, %v623_v15 }
  0x31   :  { %263 = vmatprep.mubr.bf16.mxu0 %v676_v0 }
  0x38   :  { %546 = vmatmul.mubr.msk.bf16.gmra.mrb[12].mxu0 %vm178_vm1, %v624_v16 }
  0xf3   :  { %v235_v26 = vpop.f32.mrb[0].mxu0 }
  0xf4   :  { %v339_v27 = vadd.f32 %v235_v26, %v748_v24  ;;  %v237_v28 = vpop.f32.mrb[1].mxu0 }
  0xf5   :  { %v340_v29 = vadd.f32 %v237_v28, %v750_v25  ;;  %v239_v30 = vpop.f32.mrb[2].mxu0 }
  0xf6   :  { %v342_v32 = vadd.f32 %v239_v30, %v748_v24  ;;  %v241_v33 = vpop.f32.mrb[3].mxu0  ;;  %v598_v37 = vpop.f32.mrb[0].mxu1 }
  0xf7   :  { %v567_v35 = vpack.c.bf16 %v340_v29, %v339_v27  ;;  %v343_v36 = vadd.f32 %v241_v33, %v750_v25  ;;  %v347_v39 = vadd.f32 %v598_v37, %v84_v31  ;;  %v308_v40 = vpop.f32.mrb[1].mxu1 }
  0xf8   :  { %v341_v43 = vadd.f32 %v308_v40, %v78_v34  ;;  %v599_v44 = vpop.f32.mrb[2].mxu1 }
  0xf9   :  { %495 = vst [vmem:[#allocation6] sm:$0xff] %v567_v35  ;;  %v569_v42 = vpack.c.bf16 %v343_v36, %v342_v32  ;;  %372 = vst.msk [vmem:[#allocation2 + $0x40] sm:$0xff] %vm53_vm2, %v347_v39  ;;  %v350_v45 = vadd.f32 %v599_v44, %v87_v38  ;;  %v311_v46 = vpop.f32.mrb[3].mxu1 }
  0xfa   :  { %366 = vst.msk [vmem:[#allocation2 + $0x10] sm:$0xff] %vm53_vm2, %v341_v43  ;;  %v344_v48 = vadd.f32 %v311_v46, %v81_v41 }
  0xfb   :  { %498 = vst [vmem:[#allocation6 + $0xc] sm:$0xff] %v569_v42  ;;  %v245_v47 = vpop.f32.mrb[4].mxu0  ;;  %375 = vst.msk [vmem:[#allocation2 + $0x58] sm:$0xff] %vm53_vm2, %v350_v45 }
  0xfc   :  { %v345_v49 = vadd.f32 %v245_v47, %v748_v24  ;;  %v247_v50 = vpop.f32.mrb[5].mxu0  ;;  %369 = vst.msk [vmem:[#allocation2 + $0x28] sm:$0xff] %vm53_vm2, %v344_v48 }
  0xfd   :  { %v346_v51 = vadd.f32 %v247_v50, %v750_v25  ;;  %v249_v52 = vpop.f32.mrb[6].mxu0 }
  0xfe   :  { %v348_v54 = vadd.f32 %v249_v52, %v748_v24  ;;  %v251_v55 = vpop.f32.mrb[7].mxu0  ;;  %v602_v59 = vpop.f32.mrb[4].mxu1 }
  0xff   :  { %v571_v57 = vpack.c.bf16 %v346_v51, %v345_v49  ;;  %v349_v58 = vadd.f32 %v251_v55, %v750_v25  ;;  %v359_v61 = vadd.f32 %v602_v59, %v96_v53  ;;  %v324_v62 = vpop.f32.mrb[5].mxu1 }
 0x100   :  { %v399_v1 = vld [vmem:[#allocation2 + $0x40] sm:$0xff]  ;;  %v353_v2 = vadd.f32 %v324_v62, %v90_v56  ;;  %v603_v3 = vpop.f32.mrb[6].mxu1 }
 0x101   :  { %500 = vst [vmem:[#allocation6 + $0x18] sm:$0xff] %v571_v57  ;;  %v573_v0 = vpack.c.bf16 %v349_v58, %v348_v54  ;;  %v572_v4 = vpack.c.bf16 %v399_v1, %v399_v1  ;;  %v393_v5 = vld [vmem:[#allocation2 + $0x10] sm:$0xff]  ;;  %384 = vst.msk [vmem:[#allocation2 + $0xa0] sm:$0xff] %vm53_vm2, %v359_v61  ;;  %v362_v6 = vadd.f32 %v603_v3, %v99_v60  ;;  %v327_v7 = vpop.f32.mrb[7].mxu1 }
 0x102   :  { %v568_v8 = vpack.c.bf16 %v393_v5, %v393_v5  ;;  %v402_v9 = vld [vmem:[#allocation2 + $0x58] sm:$0xff]  ;;  %378 = vst.msk [vmem:[#allocation2 + $0x70] sm:$0xff] %vm53_vm2, %v353_v2  ;;  %v356_v11 = vadd.f32 %v327_v7, %v93_v63 }
 0x103   :  { %502 = vst [vmem:[#allocation6 + $0x24] sm:$0xff] %v573_v0  ;;  %v255_v10 = vpop.f32.mrb[8].mxu0  ;;  %501 = vst.msk [vmem:[#allocation6 + $0x20] sm:$0xf] %vm496_vm3, %v572_v4  ;;  %v574_v12 = vpack.c.bf16 %v402_v9, %v402_v9  ;;  %v396_v14 = vld [vmem:[#allocation2 + $0x28] sm:$0xff] }
 0x104   :  { %v351_v13 = vadd.f32 %v255_v10, %v748_v24  ;;  %v257_v15 = vpop.f32.mrb[9].mxu0  ;;  %387 = vst.msk [vmem:[#allocation2 + $0xb8] sm:$0xff] %vm53_vm2, %v362_v6  ;;  %v570_v16 = vpack.c.bf16 %v396_v14, %v396_v14  ;;  %381 = vst.msk [vmem:[#allocation2 + $0x88] sm:$0xff] %vm53_vm2, %v356_v11 }
 0x105   :  { %497 = vst.msk [vmem:[#allocation6 + $0x8] sm:$0xf] %vm496_vm3, %v568_v8  ;;  %v352_v17 = vadd.f32 %v257_v15, %v750_v25  ;;  %v259_v18 = vpop.f32.mrb[10].mxu0  ;;  %503 = vst.msk [vmem:[#allocation6 + $0x2c] sm:$0xf] %vm496_vm3, %v574_v12 }
 0x106   :  { %v354_v19 = vadd.f32 %v259_v18, %v748_v24  ;;  %v261_v20 = vpop.f32.mrb[11].mxu0  ;;  %499 = vst.msk [vmem:[#allocation6 + $0x14] sm:$0xf] %vm496_vm3, %v570_v16 }
 0x107   :  { %v575_v21 = vpack.c.bf16 %v352_v17, %v351_v13  ;;  %v355_v22 = vadd.f32 %v261_v20, %v750_v25 }
 0x108   :  { %v411_v26 = vld [vmem:[#allocation2 + $0xa0] sm:$0xff] }
 0x109   :  { %504 = vst [vmem:[#allocation6 + $0x30] sm:$0xff] %v575_v21  ;;  %v577_v23 = vpack.c.bf16 %v355_v22, %v354_v19  ;;  %v580_v27 = vpack.c.bf16 %v411_v26, %v411_v26  ;;  %v405_v28 = vld [vmem:[#allocation2 + $0x70] sm:$0xff] }
 0x10a   :  { %v576_v29 = vpack.c.bf16 %v405_v28, %v405_v28 }
 0x10b   :  { %506 = vst [vmem:[#allocation6 + $0x3c] sm:$0xff] %v577_v23  ;;  %v414_v30 = vld [vmem:[#allocation2 + $0xb8] sm:$0xff]  ;;  %v265_v31 = vpop.f32.mrb[12].mxu0  ;;  %509 = vst.msk [vmem:[#allocation6 + $0x50] sm:$0xf] %vm496_vm3, %v580_v27  ;;  %v408_v34 = vld [vmem:[#allocation2 + $0x88] sm:$0xff] }
 0x10c   :  { %v582_v32 = vpack.c.bf16 %v414_v30, %v414_v30  ;;  %v357_v33 = vadd.f32 %v265_v31, %v748_v24  ;;  %v267_v35 = vpop.f32.mrb[13].mxu0  ;;  %505 = vst.msk [vmem:[#allocation6 + $0x38] sm:$0xf] %vm496_vm3, %v576_v29  ;;  %v578_v36 = vpack.c.bf16 %v408_v34, %v408_v34 }
 0x10d   :  { %v358_v37 = vadd.f32 %v267_v35, %v750_v25  ;;  %v269_v38 = vpop.f32.mrb[14].mxu0 }
 0x10e   :  { %511 = vst.msk [vmem:[#allocation6 + $0x5c] sm:$0xf] %vm496_vm3, %v582_v32  ;;  %v360_v39 = vadd.f32 %v269_v38, %v748_v24  ;;  %v271_v40 = vpop.f32.mrb[15].mxu0  ;;  %507 = vst.msk [vmem:[#allocation6 + $0x44] sm:$0xf] %vm496_vm3, %v578_v36 }
 0x10f   :  { %v579_v41 = vpack.c.bf16 %v358_v37, %v357_v33  ;;  %v361_v42 = vadd.f32 %v271_v40, %v750_v25 }
 0x111   :  { %508 = vst [vmem:[#allocation6 + $0x48] sm:$0xff] %v579_v41  ;;  %v581_v43 = vpack.c.bf16 %v361_v42, %v360_v39 }
 0x113   :  { %510 = vst [vmem:[#allocation6 + $0x54] sm:$0xff] %v581_v43 }
 0x114   :  { %658 = shalt.err (!%p655_p12)
}
 0x115   :  { %s659_s11 = scalar_lea.hbm %s802_s3, 1536 }
 0x116   :  { %p660_p13 = scmp.ne.s32.totalorder %s802_s3, %s659_s11  ;;  %p663_p0 = scmp.lt.u32.totalorder %s659_s11, %s802_s3 }
 0x118   :  { %p665_p1 = pnand %p663_p0, %p660_p13 }
 0x11a   :  { %668 = shalt.err (!%p665_p1)
}
 0x11b   :  { %523 = dma.vmem_to_hbm [thread:$0]  %s518_s2, 1536, %s802_s3, [#allocation5], %s674_s22, %s674_s22, %s675_s23  }
 0x11c   :  { %671 = dma.done.wait [#allocation5], 1536  }
 0x11d   :  { %672 = vsyncadd [#allocation5], 4294965760 }
 0x11e   :  { %527 = vsyncpa [#allocation4], 1 }
 0x11f   :  { %528 = vsyncpa [#allocation5], 1 }

</bundles_post_ra>
